<compile_context>
chip_gen: v5e
topology: v5e:2x2
jax: 0.10.0
libtpu: 0.0.40
codegen_flags: <defaults>
</compile_context>

<pallas_src>
import functools

import jax
import jax.numpy as jnp
from jax.experimental import pallas as pl
from jax.experimental.pallas import tpu as pltpu


def _fold_kernel(x_ref, n_ref, inv_nn_ref, o_ref, *, leak, fold_in, stretch):
    # x_ref: (TB, W) tile; n_ref: (1, W) fold normal; inv_nn_ref: (1, 1).
    x = x_ref[...].astype(jnp.float32)          # (TB, W)
    n = n_ref[...].astype(jnp.float32)          # (1, W)
    inv_nn = inv_nn_ref[...]                    # (1, 1), precomputed 1/(n.n+eps)

    # Per-row projection coefficient (reduction over W stays in-kernel).
    scales = jnp.sum(x * n, axis=-1, keepdims=True) * inv_nn      # (TB, 1)

    one = jnp.float32(1.0)
    leak_f = jnp.float32(leak)
    if fold_in:
        indicator = jnp.where(scales > one, one, leak_f)          # (TB, 1)
    else:
        indicator = jnp.where(scales < one, one, leak_f)

    folded = x + jnp.float32(stretch) * indicator * (n - scales * n)
    o_ref[...] = folded.astype(o_ref.dtype)


def _vmem_capacity_bytes():
    try:
        info = pltpu.get_tpu_info()
        cap = getattr(info, "vmem_capacity_bytes", None)
        if cap:
            return int(cap)
    except Exception:
        pass
    return 64 << 20  # conservative fallback: v7x per-TensorCore physical VMEM


def _pick_batch_tile(b, width, itemsize, vmem_cap):
    # Footprint per row: double-buffered in + out pipeline tiles in the I/O
    # dtype (2 * 2 * width * itemsize) plus ~2 f32 working copies in VMEM.
    bytes_per_row = width * (4 * itemsize + 8)
    budget = int(vmem_cap * 0.4)        # headroom for temps / compiler scratch
    tb = budget // max(bytes_per_row, 1)
    tb = max(min(tb, 4096), 8)          # diminishing returns beyond ~4k rows
    if b <= 8:
        return b                        # single full-extent block is legal
    tb = min(tb, pl.cdiv(b, 8) * 8)     # no point exceeding the rounded batch
    return max((tb // 8) * 8, 8)


def fold_forward(x, n, *, width, leak=0.0, fold_in=True, stretch=2.0,
                 batch_tile=None):
    """Pallas implementation of Fold.forward (impact=False path)."""
    b, d_in = x.shape
    if width > d_in:
        # Semantics-required feature pad (mirrors F.pad in the module).
        x = jnp.pad(x, ((0, 0), (0, width - d_in)))
    elif width < d_in:
        raise ValueError(
            f"Input dimension ({d_in}) is greater than fold width ({width})")

    nf = n.reshape(width).astype(jnp.float32)
    n2d = nf.reshape(1, width)
    inv_nn = (jnp.float32(1.0)
              / (jnp.sum(nf * nf) + jnp.float32(1e-8))).reshape(1, 1)

    itemsize = jnp.dtype(x.dtype).itemsize
    vmem_cap = _vmem_capacity_bytes()
    tb = batch_tile if batch_tile is not None else _pick_batch_tile(
        b, width, itemsize, vmem_cap)
    # TODO(synk): for extremely large width (tb=8 tile no longer fitting VMEM)
    # a second grid axis over the feature dim with a two-pass scales
    # accumulator would be needed; not implemented here.

    tile_bytes = tb * width * (4 * itemsize + 8) + 2 * width * 4
    vmem_limit = int(min(vmem_cap * 0.85,
                         max(32 << 20, tile_bytes + (8 << 20))))

    kernel = functools.partial(_fold_kernel, leak=float(leak),
                               fold_in=bool(fold_in), stretch=float(stretch))

    grid = (pl.cdiv(b, tb),)   # ragged last block: Pallas masks its writeback
    out = pl.pallas_call(
        kernel,
        out_shape=jax.ShapeDtypeStruct((b, width), x.dtype),
        grid_spec=pltpu.PrefetchScalarGridSpec(
            num_scalar_prefetch=0,
            grid=grid,
            in_specs=[
                pl.BlockSpec((tb, width), lambda i: (i, 0)),   # x tile
                pl.BlockSpec((1, width), lambda i: (0, 0)),    # n (invariant)
                pl.BlockSpec((1, 1), lambda i: (0, 0)),        # 1/(n.n + eps)
            ],
            out_specs=pl.BlockSpec((tb, width), lambda i: (i, 0)),
        ),
        compiler_params=pltpu.CompilerParams(
            dimension_semantics=("parallel",),
            vmem_limit_bytes=vmem_limit),
    )(x, n2d, inv_nn)
    return out


def fold_reference(x, n, *, width, leak=0.0, fold_in=True, stretch=2.0):
    """Pure-JAX reference matching the PyTorch forward."""
    b, d_in = x.shape
    if width > d_in:
        x = jnp.pad(x, ((0, 0), (0, width - d_in)))
    eps = 1e-8
    scales = x @ n / (n @ n + eps)
    if fold_in:
        indicator = (scales > 1).astype(jnp.float32)
    else:
        indicator = (scales < 1).astype(jnp.float32)
    indicator = indicator + (1 - indicator) * leak
    projection = scales[:, None] * n
    return x + stretch * indicator[:, None] * (n - projection)


if __name__ == "__main__":
    key = jax.random.PRNGKey(0)
    k_n, k_x = jax.random.split(key)

    width = 32        # fold width (feature dim)
    batch = 16
    in_dim = 24       # < width to exercise the semantics-required feature pad
    leak = 0.1
    stretch = 2.0     # has_stretch=False -> buffer fixed at 2.0

    # Deterministic parameter init (mirrors torch.randn(width)*sqrt(2/width);
    # the re-sample-if-tiny-norm loop effectively never triggers here).
    n = jax.random.normal(k_n, (width,), dtype=jnp.float32) * (2.0 / width) ** 0.5
    assert float(jnp.linalg.norm(n)) >= 0.01

    x = jax.random.normal(k_x, (batch, in_dim), dtype=jnp.float32)

    for fold_in in (True, False):
        out = fold_forward(x, n, width=width, leak=leak, fold_in=fold_in,
                           stretch=stretch)
        out = jax.block_until_ready(out)
        ref = fold_reference(x, n, width=width, leak=leak, fold_in=fold_in,
                             stretch=stretch)
        assert out.shape == (batch, width), out.shape
        err = float(jnp.max(jnp.abs(out - ref)))
        assert err < 1e-5, err

    # TODO(synk): `impact=True` return path (mean of indicator) is a trivial
    # host/XLA-side reduction over the per-row indicator; not emitted here.
    print("KERNEL_OK")
</pallas_src>

<mosaic_0001>
module attributes {stable_mosaic.version = 11 : i64} {
  func.func @_fold_kernel(%arg0: i32, %arg1: memref<16x32xf32, #tpu.memory_space<vmem>>, %arg2: memref<1x32xf32, #tpu.memory_space<vmem>>, %arg3: memref<1x1xf32, #tpu.memory_space<vmem>>, %arg4: memref<16x32xf32, #tpu.memory_space<vmem>>) attributes {dimension_semantics = [#tpu.dimension_semantics<parallel>], iteration_bounds = array<i64: 1>, scalar_prefetch = 0 : i64, scratch_operands = 0 : i64, tpu.core_type = #tpu.core_type<tc>, window_params = [{transform_indices = @transform_0, window_bounds = array<i64: 16, 32>}, {pipeline_mode = #tpu.pipeline_mode<synchronous>, transform_indices = @transform_1, window_bounds = array<i64: 1, 32>}, {pipeline_mode = #tpu.pipeline_mode<synchronous>, transform_indices = @transform_2, window_bounds = array<i64: 1, 1>}, {transform_indices = @transform_3, window_bounds = array<i64: 16, 32>}]} {
    %c0 = arith.constant 0 : index
    %c0_0 = arith.constant 0 : index
    %0 = vector.load %arg1[%c0, %c0_0] : memref<16x32xf32, #tpu.memory_space<vmem>>, vector<16x32xf32>
    %c0_1 = arith.constant 0 : index
    %c0_2 = arith.constant 0 : index
    %1 = vector.load %arg2[%c0_1, %c0_2] : memref<1x32xf32, #tpu.memory_space<vmem>>, vector<1x32xf32>
    %c0_3 = arith.constant 0 : index
    %c0_4 = arith.constant 0 : index
    %2 = vector.load %arg3[%c0_3, %c0_4] : memref<1x1xf32, #tpu.memory_space<vmem>>, vector<1x1xf32>
    %3 = vector.broadcast %1 : vector<1x32xf32> to vector<16x32xf32>
    %4 = arith.mulf %0, %3 : vector<16x32xf32>
    %cst = arith.constant dense<0.000000e+00> : vector<16xf32>
    %5 = vector.multi_reduction <add>, %4, %cst [1] : vector<16x32xf32> to vector<16xf32>
    %6 = vector.shape_cast %5 : vector<16xf32> to vector<16x1xf32>
    %7 = vector.broadcast %2 : vector<1x1xf32> to vector<16x1xf32>
    %8 = arith.mulf %6, %7 : vector<16x1xf32>
    %cst_5 = arith.constant 1.000000e+00 : f32
    %9 = vector.broadcast %cst_5 : f32 to vector<16x1xf32>
    %10 = arith.cmpf ogt, %8, %9 : vector<16x1xf32>
    %cst_6 = arith.constant 1.000000e+00 : f32
    %cst_7 = arith.constant 1.000000e-01 : f32
    %11 = vector.broadcast %cst_6 : f32 to vector<16x1xf32>
    %12 = vector.broadcast %cst_7 : f32 to vector<16x1xf32>
    %13 = arith.select %10, %11, %12 : vector<16x1xi1>, vector<16x1xf32>
    %cst_8 = arith.constant 2.000000e+00 : f32
    %14 = vector.broadcast %cst_8 : f32 to vector<16x1xf32>
    %15 = arith.mulf %14, %13 : vector<16x1xf32>
    %16 = vector.broadcast %8 : vector<16x1xf32> to vector<16x32xf32>
    %17 = vector.broadcast %1 : vector<1x32xf32> to vector<16x32xf32>
    %18 = arith.mulf %16, %17 : vector<16x32xf32>
    %19 = vector.broadcast %1 : vector<1x32xf32> to vector<16x32xf32>
    %20 = arith.subf %19, %18 : vector<16x32xf32>
    %21 = vector.broadcast %15 : vector<16x1xf32> to vector<16x32xf32>
    %22 = arith.mulf %21, %20 : vector<16x32xf32>
    %23 = arith.addf %0, %22 : vector<16x32xf32>
    %c0_9 = arith.constant 0 : index
    %c0_10 = arith.constant 0 : index
    %24 = vector.load %arg4[%c0_9, %c0_10] : memref<16x32xf32, #tpu.memory_space<vmem>>, vector<16x32xf32>
    tpu.vector_store %arg4[%c0_9, %c0_10], %23 {strides = array<i32>} : memref<16x32xf32, #tpu.memory_space<vmem>>, vector<16x32xf32>,
    return
  }
  func.func @transform_0(%arg0: i32) -> (i32, i32) {
    %c0_i32 = arith.constant 0 : i32
    %c0_i32_0 = arith.constant 0 : i32
    return %arg0, %c0_i32 : i32, i32
  }
  func.func @transform_1(%arg0: i32) -> (i32, i32) {
    %c0_i32 = arith.constant 0 : i32
    %c0_i32_0 = arith.constant 0 : i32
    %c0_i32_1 = arith.constant 0 : i32
    return %c0_i32, %c0_i32_0 : i32, i32
  }
  func.func @transform_2(%arg0: i32) -> (i32, i32) {
    %c0_i32 = arith.constant 0 : i32
    %c0_i32_0 = arith.constant 0 : i32
    %c0_i32_1 = arith.constant 0 : i32
    return %c0_i32, %c0_i32_0 : i32, i32
  }
  func.func @transform_3(%arg0: i32) -> (i32, i32) {
    %c0_i32 = arith.constant 0 : i32
    %c0_i32_0 = arith.constant 0 : i32
    return %arg0, %c0_i32 : i32, i32
  }
}

</mosaic_0001>

<bundles_post_ra>
// kernel: tpu_custom_call.1
= control target key start
LH: loop header
LB: loop body
LE: loop exit
PB: predicated region body
PF: predicated region fallthrough
CT: control target
= control target key end

     0   :  { %s220_s0 = inlined_call_operand.hbm [shape: f32[16,32], index: 0, kind: input, shape index: {}]   ;;  %s221_s1 = inlined_call_operand.vmem [shape: f32[1,32], index: 1, kind: input, shape index: {}]   ;;  %s222_s2 = inlined_call_operand.<no memory space> [shape: f32[1,1], index: 2, kind: input, shape index: {}]   ;;  %s223_s3 = inlined_call_operand.hbm [shape: f32[16,32], index: 3, kind: output, shape index: {}]  }
   0x1   :  { %v8_v0 = vstv %s222_s2 }
   0x2   :  { %9 = vst [vmem:[#allocation2] sm:$0x1] %v8_v0 }
   0x3   :  { %10 = vsyncpa [#allocation4], 0 }
   0x4   :  { %11 = vsyncpa [#allocation5], 0  ;;  %s16_s16 = sshll.u32 %s220_s0, 4  ;;  %s172_s17 = smov [#allocation3]   ;;  %s17_s16 = int_to_ptr.hbm [resolvable:$true] %s16_s16 }
   0x5   :  { %s18_s18 = sshll.u32 %s172_s17, 4  ;;  %s173_s19 = smov 128   ;;  %s19_s18 = int_to_ptr.vmem [resolvable:$true] %s18_s18 }
   0x6   :  { %s174_s20 = smov 8  }
   0x7   :  { %24 = dma.hbm_to_vmem [thread:$0]  %s17_s16, 256, %s19_s18, [#allocation4], %s173_s19, %s173_s19, %s174_s20  }
   0x8   :  { %168 = dma.done.wait [#allocation4], 256  }
   0x9   :  { %169 = vsyncadd [#allocation4], 4294967040  ;;  %v33_v1 = vld [vmem:[#allocation3] sm:$0xff]  ;;  %v118_v2 = vld [vmem:[%s221_s1] ss:$0 sm:$0xff]  ;;  %vm42_vm0 = vcmask 261120  }
   0xa   :  { %v40_v3 = vmul.f32 %v118_v2, %v33_v1  ;;  %v34_v4 = vld [vmem:[#allocation3 + $0x8] sm:$0xff]  ;;  %v175_v8 = vmov 0   ;;  %v119_v9 = vld [vmem:[#allocation2] ss:$0 sm:$0xff]  ;;  %v176_v12 = vmov 0.1  }
   0xb   :  { %v41_v6 = vmul.f32 %v118_v2, %v34_v4  ;;  %115 = vset.pattern.permute.xlu1 %v175_v8  ;;  %116 = vset.pattern.permute.xlu2 %v175_v8  ;;  %s177_s0 = smov [#allocation6]   ;;  %s96_s24 = sshll.u32 %s223_s3, 4  ;;  %s97_s24 = int_to_ptr.hbm [resolvable:$true] %s96_s24 }
   0xc   :  { %v43_v5 = vsel %vm42_vm0, %v40_v3, 0.0  ;;  %117 = vset.pattern.permute.xlu0 %v175_v8  ;;  %s94_s1 = sshll.u32 %s177_s0, 4  ;;  %s95_s1 = int_to_ptr.vmem [resolvable:$true] %s94_s1 }
   0xd   :  { %44 = vadd.xlane.f32.xlu0 %v43_v5  ;;  %v46_v7 = vsel %vm42_vm0, %v41_v6, 0.0 }
  0x15   :  { %47 = vadd.xlane.f32.xlu0 %v46_v7 }
  0x80   :  { %v45_v10 = vpop.xlane.xlu0 %44 }
  0x81   :  { %v52_v11 = vmul.f32 %v119_v9, %v45_v10 }
  0x83   :  { %vm54_vm1 = vcmp.gt.f32.partialorder %v52_v11, 1.0  ;;  %62 = vperm.xlu1 %115, %v52_v11  }
  0x84   :  { %v56_v13 = vsel %vm54_vm1, 1.0, %v176_v12 }
  0x85   :  { %v58_v14 = vmul.f32 2.0, %v56_v13 }
  0x87   :  { %76 = vperm.xlu2 %116, %v58_v14  }
  0x88   :  { %v48_v15 = vpop.xlane.xlu0 %47 }
  0x89   :  { %v53_v16 = vmul.f32 %v119_v9, %v48_v15 }
  0x8b   :  { %vm55_vm2 = vcmp.gt.f32.partialorder %v53_v16, 1.0  ;;  %67 = vperm.xlu1 %115, %v53_v16  }
  0x8c   :  { %v57_v17 = vsel %vm55_vm2, 1.0, %v176_v12 }
  0x8d   :  { %v59_v18 = vmul.f32 2.0, %v57_v17 }
  0x8f   :  { %81 = vperm.xlu2 %116, %v59_v18  }
  0xe1   :  { %v77_v21 = vpop.permute.xlu2 %76 }
  0xe9   :  { %v82_v28 = vpop.permute.xlu2 %81 }
  0xf5   :  { %v63_v19 = vpop.permute.xlu1 %62 }
  0xf6   :  { %v70_v20 = vmul.f32 %v118_v2, %v63_v19 }
  0xf8   :  { %v72_v22 = vsub.f32 %v118_v2, %v70_v20 }
  0xfa   :  { %v84_v23 = vmul.f32 %v77_v21, %v72_v22 }
  0xfc   :  { %v86_v24 = vadd.f32 %v84_v23, %v33_v1 }
  0xfd   :  { %v68_v25 = vpop.permute.xlu1 %67 }
  0xfe   :  { %88 = vst.msk [vmem:[#allocation6] sm:$0xff] %vm42_vm0, %v86_v24  ;;  %v71_v26 = vmul.f32 %v118_v2, %v68_v25 }
 0x100   :  { %v73_v27 = vsub.f32 %v118_v2, %v71_v26 }
 0x102   :  { %v85_v29 = vmul.f32 %v82_v28, %v73_v27 }
 0x104   :  { %v87_v30 = vadd.f32 %v85_v29, %v34_v4 }
 0x106   :  { %89 = vst.msk [vmem:[#allocation6 + $0x8] sm:$0xff] %vm42_vm0, %v87_v30 }
 0x107   :  { %102 = dma.vmem_to_hbm [thread:$0]  %s95_s1, 256, %s97_s24, [#allocation5], %s173_s19, %s173_s19, %s174_s20  }
 0x108   :  { %170 = dma.done.wait [#allocation5], 256  }
 0x109   :  { %171 = vsyncadd [#allocation5], 4294967040 }
 0x10a   :  { %107 = vsyncpa [#allocation4], 1 }
 0x10b   :  { %108 = vsyncpa [#allocation5], 1 }

</bundles_post_ra>
